<compile_context>
chip_gen: v5e
topology: v5e:2x2
jax: 0.10.0
libtpu: 0.0.40
codegen_flags: <defaults>
</compile_context>

<pallas_src>
import functools

import jax
import jax.numpy as jnp
from jax.experimental import pallas as pl
from jax.experimental.pallas import tpu as pltpu

KS = 3          # kernel size
PD = 1          # padding
BN_EPS = 1e-5   # torch.nn.BatchNorm2d default eps


def _fused_kernel(x_ref, w_ref, scale_ref, bias_ref, out_ref,
                  conv_sc, sum_sc, sq_sc, ab_sc, *, nb, count):
    """2-phase fused conv + BN(batch stats) + affine + ReLU.

    grid = (2, N // nb); axis 0 = phase (serial), axis 1 = batch block.

    x_ref              : (nb, 9*Cin, HW) im2col activation block (phase 0 only)
    w_ref              : (Cout, 9*Cin)   folded conv weight
    scale_ref, bias_ref: (Cout, 1)
    out_ref            : (nb, Cout, HW)
    conv_sc            : (N, Cout, HW) f32  persistent conv residency (VMEM)
    sum_sc, sq_sc      : (Cout, 1) f32      one-pass BN accumulators
    ab_sc              : (2, Cout, 1) f32   folded (a, b) = BN + affine
    """
    p = pl.program_id(0)
    i = pl.program_id(1)

    @pl.when(p == 0)
    def _conv_phase():
        @pl.when(i == 0)
        def _():
            sum_sc[...] = jnp.zeros_like(sum_sc)
            sq_sc[...] = jnp.zeros_like(sq_sc)

        w = w_ref[...]                              # (Cout, 9*Cin)
        cout = w.shape[0]
        s = jnp.zeros((cout, 1), jnp.float32)
        sq = jnp.zeros((cout, 1), jnp.float32)
        for j in range(nb):                         # static unroll over images
            # One lane-dense MXU matmul per image: (Cout,9Cin) @ (9Cin,HW).
            conv_j = jnp.dot(w, x_ref[j], preferred_element_type=jnp.float32)
            conv_sc[i * nb + j] = conv_j
            s = s + jnp.sum(conv_j, axis=-1, keepdims=True)
            sq = sq + jnp.sum(conv_j * conv_j, axis=-1, keepdims=True)
        sum_sc[...] += s
        sq_sc[...] += sq

    @pl.when(p == 1)
    def _norm_phase():
        @pl.when(i == 0)
        def _():
            # BN finalize done exactly once: fold mean/var/scale/bias into a,b.
            inv_cnt = 1.0 / count
            mean = sum_sc[...] * inv_cnt
            var = jnp.maximum(sq_sc[...] * inv_cnt - mean * mean, 0.0)
            a = jax.lax.rsqrt(var + BN_EPS) * scale_ref[...]
            ab_sc[0] = a
            ab_sc[1] = bias_ref[...] - mean * a

        a = ab_sc[0]                                # (Cout, 1)
        b = ab_sc[1]
        for j in range(nb):
            y = conv_sc[i * nb + j] * a + b         # (Cout, HW), lane-dense
            out_ref[j] = jnp.maximum(y, 0.0)


def _conv_stats_kernel(x_ref, w_ref, conv_ref, stats_ref):
    """Fallback pass 1: conv + packed per-step BN partial sums."""
    nb = x_ref.shape[0]
    w = w_ref[...]
    cout = w.shape[0]
    s = jnp.zeros((cout, 1), jnp.float32)
    sq = jnp.zeros((cout, 1), jnp.float32)
    for j in range(nb):
        conv_j = jnp.dot(w, x_ref[j], preferred_element_type=jnp.float32)
        conv_ref[j] = conv_j
        s = s + jnp.sum(conv_j, axis=-1, keepdims=True)
        sq = sq + jnp.sum(conv_j * conv_j, axis=-1, keepdims=True)
    stats_ref[0] = jnp.concatenate([s, sq], axis=-1)    # (Cout, 2)


def _affine_relu_kernel(a_ref, b_ref, conv_ref, out_ref):
    """Fallback pass 2: streaming out = relu(conv * a + b) (a, b precomputed)."""
    a = a_ref[...]
    b = b_ref[...]
    for j in range(conv_ref.shape[0]):
        out_ref[j] = jnp.maximum(conv_ref[j] * a + b, 0.0)


def _pick_nb(n, per_image_bytes, budget_bytes=2 << 20):
    """Largest divisor of n whose per-step block bytes fit the budget."""
    nb = 1
    for d in range(1, n + 1):
        if n % d == 0 and d * per_image_bytes <= budget_bytes:
            nb = d
    return nb


def passport_private_block(x_nchw, weight, scale, bias):
    """x_nchw: (N, Cin, H, W); weight: (Cout, Cin, KS, KS); scale/bias: (Cout,)."""
    N, Cin, H, W = x_nchw.shape
    Cout = weight.shape[0]
    HW = H * W
    KK = KS * KS

    # ---- wrapper glue: lane-dense im2col (spatial on the lane dim) ----------
    x_f = x_nchw.astype(jnp.float32)
    xp = jnp.pad(x_f, ((0, 0), (0, 0), (PD, PD), (PD, PD)))   # (N, Cin, Hp, Wp)
    cols = [xp[:, :, dy:dy + H, dx:dx + W].reshape(N, Cin, HW)
            for dy in range(KS) for dx in range(KS)]
    x_col = jnp.concatenate(cols, axis=1)                     # (N, 9*Cin, HW)

    # (Cout, Cin, KS, KS) -> (Cout, 9*Cin), row order matching x_col (tap, cin).
    w_mat = jnp.transpose(weight.astype(jnp.float32),
                          (0, 2, 3, 1)).reshape(Cout, KK * Cin)

    scale2 = scale.reshape(Cout, 1).astype(jnp.float32)
    bias2 = bias.reshape(Cout, 1).astype(jnp.float32)
    # NOTE: baked at trace time; dynamic batch size would need a scalar input.
    count = float(N * HW)

    # Images per grid step: amortize per-step overhead while keeping blocks small.
    per_img = (KK * Cin + Cout) * HW * 4
    nb = _pick_nb(N, per_img, budget_bytes=2 << 20)
    n_blk = N // nb

    # VMEM gate for the fused (conv-resident) path, sized for v7x's 64 MiB.
    conv_bytes = N * Cout * HW * 4
    step_bytes = 2 * nb * (KK * Cin + Cout) * HW * 4 + Cout * KK * Cin * 4
    fused_fits = conv_bytes + step_bytes + (1 << 20) <= (40 << 20)

    if fused_fits:
        out_cm = pl.pallas_call(
            functools.partial(_fused_kernel, nb=nb, count=count),
            out_shape=jax.ShapeDtypeStruct((N, Cout, HW), jnp.float32),
            grid=(2, n_blk),
            in_specs=[
                # phase 0: block i; phase 1: pin to last block (no re-fetch).
                pl.BlockSpec((nb, KK * Cin, HW),
                             lambda p, i: ((1 - p) * i + p * (n_blk - 1), 0, 0)),
                pl.BlockSpec((Cout, KK * Cin), lambda p, i: (0, 0)),
                pl.BlockSpec((Cout, 1), lambda p, i: (0, 0)),
                pl.BlockSpec((Cout, 1), lambda p, i: (0, 0)),
            ],
            # phase 0: park on block 0 (never written); phase 1: block i.
            out_specs=pl.BlockSpec((nb, Cout, HW), lambda p, i: (p * i, 0, 0)),
            scratch_shapes=[
                pltpu.VMEM((N, Cout, HW), jnp.float32),   # conv residency
                pltpu.VMEM((Cout, 1), jnp.float32),       # sum
                pltpu.VMEM((Cout, 1), jnp.float32),       # sum of squares
                pltpu.VMEM((2, Cout, 1), jnp.float32),    # folded (a, b)
            ],
            compiler_params=pltpu.CompilerParams(
                dimension_semantics=("arbitrary", "arbitrary"),
                vmem_limit_bytes=48 << 20),
        )(x_col, w_mat, scale2, bias2)
        return out_cm.reshape(N, Cout, H, W)

    # ---- fallback: conv does not fit VMEM -> two streaming passes -----------
    conv_cm, stats = pl.pallas_call(
        _conv_stats_kernel,
        out_shape=(jax.ShapeDtypeStruct((N, Cout, HW), jnp.float32),
                   jax.ShapeDtypeStruct((n_blk, Cout, 2), jnp.float32)),
        grid=(n_blk,),
        in_specs=[
            pl.BlockSpec((nb, KK * Cin, HW), lambda i: (i, 0, 0)),
            pl.BlockSpec((Cout, KK * Cin), lambda i: (0, 0)),
        ],
        out_specs=(pl.BlockSpec((nb, Cout, HW), lambda i: (i, 0, 0)),
                   pl.BlockSpec((1, Cout, 2), lambda i: (i, 0, 0))),
        compiler_params=pltpu.CompilerParams(
            dimension_semantics=("parallel",),
            vmem_limit_bytes=48 << 20),
    )(x_col, w_mat)

    # BN finalize hoisted to the wrapper (tiny Cout-sized math, done once).
    tot = jnp.sum(stats, axis=0)                     # (Cout, 2)
    mean = tot[:, 0:1] / count
    var = jnp.maximum(tot[:, 1:2] / count - mean * mean, 0.0)
    a = jax.lax.rsqrt(var + BN_EPS) * scale2
    b = bias2 - mean * a

    out_cm = pl.pallas_call(
        _affine_relu_kernel,
        out_shape=jax.ShapeDtypeStruct((N, Cout, HW), jnp.float32),
        grid=(n_blk,),
        in_specs=[
            pl.BlockSpec((Cout, 1), lambda i: (0, 0)),
            pl.BlockSpec((Cout, 1), lambda i: (0, 0)),
            pl.BlockSpec((nb, Cout, HW), lambda i: (i, 0, 0)),
        ],
        out_specs=pl.BlockSpec((nb, Cout, HW), lambda i: (i, 0, 0)),
        input_output_aliases={2: 0},   # ReLU result written in place over conv
        compiler_params=pltpu.CompilerParams(
            dimension_semantics=("parallel",),
            vmem_limit_bytes=48 << 20),
    )(a, b, conv_cm)
    return out_cm.reshape(N, Cout, H, W)


def _reference(x_nchw, weight, scale, bias):
    """Pure-JAX reference (lax conv + batchnorm(batch stats) + affine + relu)."""
    y = jax.lax.conv_general_dilated(
        x_nchw.astype(jnp.float32), weight.astype(jnp.float32),
        window_strides=(1, 1), padding=((PD, PD), (PD, PD)),
        dimension_numbers=("NCHW", "OIHW", "NCHW"))
    mean = jnp.mean(y, axis=(0, 2, 3), keepdims=True)
    var = jnp.mean((y - mean) ** 2, axis=(0, 2, 3), keepdims=True)
    yn = (y - mean) * jax.lax.rsqrt(var + BN_EPS)
    yn = yn * scale[None, :, None, None] + bias[None, :, None, None]
    return jnp.maximum(yn, 0.0)


if __name__ == "__main__":
    key = jax.random.PRNGKey(0)
    k_x, k_w, k_s, k_b = jax.random.split(key, 4)

    # Module config: i=4 in-channels, o=8 out-channels, ks=3, s=1, pd=1.
    N, Cin, H, W = 2, 4, 16, 16
    Cout = 8

    x = jax.random.normal(k_x, (N, Cin, H, W), dtype=jnp.float32)

    # kaiming_normal_(mode='fan_out', nonlinearity='relu'): std = sqrt(2/fan_out)
    fan_out = Cout * KS * KS
    std = (2.0 / fan_out) ** 0.5
    weight = jax.random.normal(k_w, (Cout, Cin, KS, KS), dtype=jnp.float32) * std
    # Learnable per-channel scale/bias (init ones/zeros; perturb to exercise them).
    scale = 1.0 + 0.1 * jax.random.normal(k_s, (Cout,), dtype=jnp.float32)
    bias = 0.1 * jax.random.normal(k_b, (Cout,), dtype=jnp.float32)

    fwd = jax.jit(passport_private_block)
    out = jax.block_until_ready(fwd(x, weight, scale, bias))
    ref = jax.block_until_ready(_reference(x, weight, scale, bias))

    assert out.shape == (N, Cout, H, W)
    err = float(jnp.max(jnp.abs(out - ref)))
    assert jnp.allclose(out, ref, atol=1e-4, rtol=1e-4), err
    print("KERNEL_OK")
</pallas_src>

<mosaic_0001>
module attributes {stable_mosaic.version = 11 : i64} {
  func.func @_fused_kernel(%arg0: i32, %arg1: i32, %arg2: memref<2x36x256xf32, #tpu.memory_space<vmem>>, %arg3: memref<8x36xf32, #tpu.memory_space<vmem>>, %arg4: memref<8x1xf32, #tpu.memory_space<vmem>>, %arg5: memref<8x1xf32, #tpu.memory_space<vmem>>, %arg6: memref<2x8x256xf32, #tpu.memory_space<vmem>>, %arg7: memref<2x8x256xf32, #tpu.memory_space<vmem>>, %arg8: memref<8x1xf32, #tpu.memory_space<vmem>>, %arg9: memref<8x1xf32, #tpu.memory_space<vmem>>, %arg10: memref<2x8x1xf32, #tpu.memory_space<vmem>>) attributes {dimension_semantics = [#tpu.dimension_semantics<arbitrary>, #tpu.dimension_semantics<arbitrary>], iteration_bounds = array<i64: 2, 1>, scalar_prefetch = 0 : i64, scratch_operands = 4 : i64, tpu.core_type = #tpu.core_type<tc>, window_params = [{transform_indices = @transform_0, window_bounds = array<i64: 2, 36, 256>}, {pipeline_mode = #tpu.pipeline_mode<synchronous>, transform_indices = @transform_1, window_bounds = array<i64: 8, 36>}, {pipeline_mode = #tpu.pipeline_mode<synchronous>, transform_indices = @transform_2, window_bounds = array<i64: 8, 1>}, {pipeline_mode = #tpu.pipeline_mode<synchronous>, transform_indices = @transform_3, window_bounds = array<i64: 8, 1>}, {transform_indices = @transform_4, window_bounds = array<i64: 2, 8, 256>}]} {
    %c0_i32 = arith.constant 0 : i32
    %0 = arith.cmpi eq, %arg0, %c0_i32 : i32
    %1 = arith.extui %0 : i1 to i32
    %c0_i32_0 = arith.constant 0 : i32
    %2 = arith.cmpi ne, %1, %c0_i32_0 : i32
    scf.if %2 {
      %c0_i32_2 = arith.constant 0 : i32
      %6 = arith.cmpi eq, %arg1, %c0_i32_2 : i32
      %7 = arith.extui %6 : i1 to i32
      %c0_i32_3 = arith.constant 0 : i32
      %8 = arith.cmpi ne, %7, %c0_i32_3 : i32
      scf.if %8 {
        %cst_32 = arith.constant 0.000000e+00 : f32
        %50 = vector.broadcast %cst_32 : f32 to vector<8x1xf32>
        %c0_33 = arith.constant 0 : index
        %c0_34 = arith.constant 0 : index
        %51 = vector.load %arg8[%c0_33, %c0_34] : memref<8x1xf32, #tpu.memory_space<vmem>>, vector<8x1xf32>
        tpu.vector_store %arg8[%c0_33, %c0_34], %50 {strides = array<i32>} : memref<8x1xf32, #tpu.memory_space<vmem>>, vector<8x1xf32>,
        %cst_35 = arith.constant 0.000000e+00 : f32
        %52 = vector.broadcast %cst_35 : f32 to vector<8x1xf32>
        %c0_36 = arith.constant 0 : index
        %c0_37 = arith.constant 0 : index
        %53 = vector.load %arg9[%c0_36, %c0_37] : memref<8x1xf32, #tpu.memory_space<vmem>>, vector<8x1xf32>
        tpu.vector_store %arg9[%c0_36, %c0_37], %52 {strides = array<i32>} : memref<8x1xf32, #tpu.memory_space<vmem>>, vector<8x1xf32>,
      } else {
      }
      %c0 = arith.constant 0 : index
      %c0_4 = arith.constant 0 : index
      %9 = vector.load %arg3[%c0, %c0_4] : memref<8x36xf32, #tpu.memory_space<vmem>>, vector<8x36xf32>
      %cst = arith.constant 0.000000e+00 : f32
      %10 = vector.broadcast %cst : f32 to vector<8x1xf32>
      %cst_5 = arith.constant 0.000000e+00 : f32
      %11 = vector.broadcast %cst_5 : f32 to vector<8x1xf32>
      %c0_6 = arith.constant 0 : index
      %c0_7 = arith.constant 0 : index
      %c0_8 = arith.constant 0 : index
      %12 = vector.load %arg2[%c0_6, %c0_7, %c0_8] : memref<2x36x256xf32, #tpu.memory_space<vmem>>, vector<1x36x256xf32>
      %13 = vector.shape_cast %12 : vector<1x36x256xf32> to vector<36x256xf32>
      %cst_9 = arith.constant dense<0.000000e+00> : vector<8x256xf32>
      %14 = tpu.matmul %9, %13, %cst_9 {dimension_numbers = #tpu.dot_dimension_numbers<[1], [0], [0], [1], [0, 0, 1, 1], [], []>} : vector<8x36xf32>, vector<36x256xf32>, vector<8x256xf32> -> vector<8x256xf32>
      %c2_i32 = arith.constant 2 : i32
      %15 = arith.muli %arg1, %c2_i32 : i32
      %c0_i32_10 = arith.constant 0 : i32
      %16 = arith.addi %15, %c0_i32_10 : i32
      %17 = arith.index_cast %16 : i32 to index
      %c0_11 = arith.constant 0 : index
      %c0_12 = arith.constant 0 : index
      %18 = vector.load %arg7[%17, %c0_11, %c0_12] : memref<2x8x256xf32, #tpu.memory_space<vmem>>, vector<1x8x256xf32>
      %19 = vector.shape_cast %18 : vector<1x8x256xf32> to vector<8x256xf32>
      %20 = vector.shape_cast %14 : vector<8x256xf32> to vector<1x8x256xf32>
      tpu.vector_store %arg7[%17, %c0_11, %c0_12], %20 {strides = array<i32>} : memref<2x8x256xf32, #tpu.memory_space<vmem>>, vector<1x8x256xf32>,
      %cst_13 = arith.constant dense<0.000000e+00> : vector<8xf32>
      %21 = vector.multi_reduction <add>, %14, %cst_13 [1] : vector<8x256xf32> to vector<8xf32>
      %22 = vector.shape_cast %21 : vector<8xf32> to vector<8x1xf32>
      %23 = arith.addf %10, %22 : vector<8x1xf32>
      %24 = arith.mulf %14, %14 : vector<8x256xf32>
      %cst_14 = arith.constant dense<0.000000e+00> : vector<8xf32>
      %25 = vector.multi_reduction <add>, %24, %cst_14 [1] : vector<8x256xf32> to vector<8xf32>
      %26 = vector.shape_cast %25 : vector<8xf32> to vector<8x1xf32>
      %27 = arith.addf %11, %26 : vector<8x1xf32>
      %c1 = arith.constant 1 : index
      %c0_15 = arith.constant 0 : index
      %c0_16 = arith.constant 0 : index
      %28 = vector.load %arg2[%c1, %c0_15, %c0_16] : memref<2x36x256xf32, #tpu.memory_space<vmem>>, vector<1x36x256xf32>
      %29 = vector.shape_cast %28 : vector<1x36x256xf32> to vector<36x256xf32>
      %cst_17 = arith.constant dense<0.000000e+00> : vector<8x256xf32>
      %30 = tpu.matmul %9, %29, %cst_17 {dimension_numbers = #tpu.dot_dimension_numbers<[1], [0], [0], [1], [0, 0, 1, 1], [], []>} : vector<8x36xf32>, vector<36x256xf32>, vector<8x256xf32> -> vector<8x256xf32>
      %c2_i32_18 = arith.constant 2 : i32
      %31 = arith.muli %arg1, %c2_i32_18 : i32
      %c1_i32_19 = arith.constant 1 : i32
      %32 = arith.addi %31, %c1_i32_19 : i32
      %33 = arith.index_cast %32 : i32 to index
      %c0_20 = arith.constant 0 : index
      %c0_21 = arith.constant 0 : index
      %34 = vector.load %arg7[%33, %c0_20, %c0_21] : memref<2x8x256xf32, #tpu.memory_space<vmem>>, vector<1x8x256xf32>
      %35 = vector.shape_cast %34 : vector<1x8x256xf32> to vector<8x256xf32>
      %36 = vector.shape_cast %30 : vector<8x256xf32> to vector<1x8x256xf32>
      tpu.vector_store %arg7[%33, %c0_20, %c0_21], %36 {strides = array<i32>} : memref<2x8x256xf32, #tpu.memory_space<vmem>>, vector<1x8x256xf32>,
      %cst_22 = arith.constant dense<0.000000e+00> : vector<8xf32>
      %37 = vector.multi_reduction <add>, %30, %cst_22 [1] : vector<8x256xf32> to vector<8xf32>
      %38 = vector.shape_cast %37 : vector<8xf32> to vector<8x1xf32>
      %39 = arith.addf %23, %38 : vector<8x1xf32>
      %40 = arith.mulf %30, %30 : vector<8x256xf32>
      %cst_23 = arith.constant dense<0.000000e+00> : vector<8xf32>
      %41 = vector.multi_reduction <add>, %40, %cst_23 [1] : vector<8x256xf32> to vector<8xf32>
      %42 = vector.shape_cast %41 : vector<8xf32> to vector<8x1xf32>
      %43 = arith.addf %27, %42 : vector<8x1xf32>
      %c0_24 = arith.constant 0 : index
      %c0_25 = arith.constant 0 : index
      %44 = vector.load %arg8[%c0_24, %c0_25] : memref<8x1xf32, #tpu.memory_space<vmem>>, vector<8x1xf32>
      %45 = arith.addf %44, %39 : vector<8x1xf32>
      %c0_26 = arith.constant 0 : index
      %c0_27 = arith.constant 0 : index
      %46 = vector.load %arg8[%c0_26, %c0_27] : memref<8x1xf32, #tpu.memory_space<vmem>>, vector<8x1xf32>
      tpu.vector_store %arg8[%c0_26, %c0_27], %45 {strides = array<i32>} : memref<8x1xf32, #tpu.memory_space<vmem>>, vector<8x1xf32>,
      %c0_28 = arith.constant 0 : index
      %c0_29 = arith.constant 0 : index
      %47 = vector.load %arg9[%c0_28, %c0_29] : memref<8x1xf32, #tpu.memory_space<vmem>>, vector<8x1xf32>
      %48 = arith.addf %47, %43 : vector<8x1xf32>
      %c0_30 = arith.constant 0 : index
      %c0_31 = arith.constant 0 : index
      %49 = vector.load %arg9[%c0_30, %c0_31] : memref<8x1xf32, #tpu.memory_space<vmem>>, vector<8x1xf32>
      tpu.vector_store %arg9[%c0_30, %c0_31], %48 {strides = array<i32>} : memref<8x1xf32, #tpu.memory_space<vmem>>, vector<8x1xf32>,
    } else {
    }
    %c1_i32 = arith.constant 1 : i32
    %3 = arith.cmpi eq, %arg0, %c1_i32 : i32
    %4 = arith.extui %3 : i1 to i32
    %c0_i32_1 = arith.constant 0 : i32
    %5 = arith.cmpi ne, %4, %c0_i32_1 : i32
    scf.if %5 {
      %c0_i32_2 = arith.constant 0 : i32
      %6 = arith.cmpi eq, %arg1, %c0_i32_2 : i32
      %7 = arith.extui %6 : i1 to i32
      %c0_i32_3 = arith.constant 0 : i32
      %8 = arith.cmpi ne, %7, %c0_i32_3 : i32
      scf.if %8 {
        %c0_22 = arith.constant 0 : index
        %c0_23 = arith.constant 0 : index
        %41 = vector.load %arg8[%c0_22, %c0_23] : memref<8x1xf32, #tpu.memory_space<vmem>>, vector<8x1xf32>
        %cst_24 = arith.constant 0.001953125 : f32
        %42 = vector.broadcast %cst_24 : f32 to vector<8x1xf32>
        %43 = arith.mulf %41, %42 : vector<8x1xf32>
        %c0_25 = arith.constant 0 : index
        %c0_26 = arith.constant 0 : index
        %44 = vector.load %arg9[%c0_25, %c0_26] : memref<8x1xf32, #tpu.memory_space<vmem>>, vector<8x1xf32>
        %cst_27 = arith.constant 0.001953125 : f32
        %45 = vector.broadcast %cst_27 : f32 to vector<8x1xf32>
        %46 = arith.mulf %44, %45 : vector<8x1xf32>
        %47 = arith.mulf %43, %43 : vector<8x1xf32>
        %48 = arith.subf %46, %47 : vector<8x1xf32>
        %cst_28 = arith.constant 0.000000e+00 : f32
        %49 = vector.broadcast %cst_28 : f32 to vector<8x1xf32>
        %50 = arith.maximumf %48, %49 : vector<8x1xf32>
        %cst_29 = arith.constant 9.99999974E-6 : f32
        %51 = vector.broadcast %cst_29 : f32 to vector<8x1xf32>
        %52 = arith.addf %50, %51 : vector<8x1xf32>
        %53 = math.rsqrt %52 : vector<8x1xf32>
        %c0_30 = arith.constant 0 : index
        %c0_31 = arith.constant 0 : index
        %54 = vector.load %arg4[%c0_30, %c0_31] : memref<8x1xf32, #tpu.memory_space<vmem>>, vector<8x1xf32>
        %55 = arith.mulf %53, %54 : vector<8x1xf32>
        %c0_32 = arith.constant 0 : index
        %c0_33 = arith.constant 0 : index
        %c0_34 = arith.constant 0 : index
        %56 = vector.load %arg10[%c0_32, %c0_33, %c0_34] : memref<2x8x1xf32, #tpu.memory_space<vmem>>, vector<1x8x1xf32>
        %57 = vector.shape_cast %56 : vector<1x8x1xf32> to vector<8x1xf32>
        %58 = vector.shape_cast %55 : vector<8x1xf32> to vector<1x8x1xf32>
        tpu.vector_store %arg10[%c0_32, %c0_33, %c0_34], %58 {strides = array<i32>} : memref<2x8x1xf32, #tpu.memory_space<vmem>>, vector<1x8x1xf32>,
        %c0_35 = arith.constant 0 : index
        %c0_36 = arith.constant 0 : index
        %59 = vector.load %arg5[%c0_35, %c0_36] : memref<8x1xf32, #tpu.memory_space<vmem>>, vector<8x1xf32>
        %60 = arith.mulf %43, %55 : vector<8x1xf32>
        %61 = arith.subf %59, %60 : vector<8x1xf32>
        %c1_37 = arith.constant 1 : index
        %c0_38 = arith.constant 0 : index
        %c0_39 = arith.constant 0 : index
        %62 = vector.load %arg10[%c1_37, %c0_38, %c0_39] : memref<2x8x1xf32, #tpu.memory_space<vmem>>, vector<1x8x1xf32>
        %63 = vector.shape_cast %62 : vector<1x8x1xf32> to vector<8x1xf32>
        %64 = vector.shape_cast %61 : vector<8x1xf32> to vector<1x8x1xf32>
        tpu.vector_store %arg10[%c1_37, %c0_38, %c0_39], %64 {strides = array<i32>} : memref<2x8x1xf32, #tpu.memory_space<vmem>>, vector<1x8x1xf32>,
      } else {
      }
      %c0 = arith.constant 0 : index
      %c0_4 = arith.constant 0 : index
      %c0_5 = arith.constant 0 : index
      %9 = vector.load %arg10[%c0, %c0_4, %c0_5] : memref<2x8x1xf32, #tpu.memory_space<vmem>>, vector<1x8x1xf32>
      %10 = vector.shape_cast %9 : vector<1x8x1xf32> to vector<8x1xf32>
      %c1 = arith.constant 1 : index
      %c0_6 = arith.constant 0 : index
      %c0_7 = arith.constant 0 : index
      %11 = vector.load %arg10[%c1, %c0_6, %c0_7] : memref<2x8x1xf32, #tpu.memory_space<vmem>>, vector<1x8x1xf32>
      %12 = vector.shape_cast %11 : vector<1x8x1xf32> to vector<8x1xf32>
      %c2_i32 = arith.constant 2 : i32
      %13 = arith.muli %arg1, %c2_i32 : i32
      %c0_i32_8 = arith.constant 0 : i32
      %14 = arith.addi %13, %c0_i32_8 : i32
      %15 = arith.index_cast %14 : i32 to index
      %c0_9 = arith.constant 0 : index
      %c0_10 = arith.constant 0 : index
      %16 = vector.load %arg7[%15, %c0_9, %c0_10] : memref<2x8x256xf32, #tpu.memory_space<vmem>>, vector<1x8x256xf32>
      %17 = vector.shape_cast %16 : vector<1x8x256xf32> to vector<8x256xf32>
      %18 = vector.broadcast %10 : vector<8x1xf32> to vector<8x256xf32>
      %19 = arith.mulf %17, %18 : vector<8x256xf32>
      %20 = vector.broadcast %12 : vector<8x1xf32> to vector<8x256xf32>
      %21 = arith.addf %19, %20 : vector<8x256xf32>
      %cst = arith.constant 0.000000e+00 : f32
      %22 = vector.broadcast %cst : f32 to vector<8x256xf32>
      %23 = arith.maximumf %21, %22 : vector<8x256xf32>
      %c0_11 = arith.constant 0 : index
      %c0_12 = arith.constant 0 : index
      %c0_13 = arith.constant 0 : index
      %24 = vector.load %arg6[%c0_11, %c0_12, %c0_13] : memref<2x8x256xf32, #tpu.memory_space<vmem>>, vector<1x8x256xf32>
      %25 = vector.shape_cast %24 : vector<1x8x256xf32> to vector<8x256xf32>
      %26 = vector.shape_cast %23 : vector<8x256xf32> to vector<1x8x256xf32>
      tpu.vector_store %arg6[%c0_11, %c0_12, %c0_13], %26 {strides = array<i32>} : memref<2x8x256xf32, #tpu.memory_space<vmem>>, vector<1x8x256xf32>,
      %c2_i32_14 = arith.constant 2 : i32
      %27 = arith.muli %arg1, %c2_i32_14 : i32
      %c1_i32_15 = arith.constant 1 : i32
      %28 = arith.addi %27, %c1_i32_15 : i32
      %29 = arith.index_cast %28 : i32 to index
      %c0_16 = arith.constant 0 : index
      %c0_17 = arith.constant 0 : index
      %30 = vector.load %arg7[%29, %c0_16, %c0_17] : memref<2x8x256xf32, #tpu.memory_space<vmem>>, vector<1x8x256xf32>
      %31 = vector.shape_cast %30 : vector<1x8x256xf32> to vector<8x256xf32>
      %32 = vector.broadcast %10 : vector<8x1xf32> to vector<8x256xf32>
      %33 = arith.mulf %31, %32 : vector<8x256xf32>
      %34 = vector.broadcast %12 : vector<8x1xf32> to vector<8x256xf32>
      %35 = arith.addf %33, %34 : vector<8x256xf32>
      %cst_18 = arith.constant 0.000000e+00 : f32
      %36 = vector.broadcast %cst_18 : f32 to vector<8x256xf32>
      %37 = arith.maximumf %35, %36 : vector<8x256xf32>
      %c1_19 = arith.constant 1 : index
      %c0_20 = arith.constant 0 : index
      %c0_21 = arith.constant 0 : index
      %38 = vector.load %arg6[%c1_19, %c0_20, %c0_21] : memref<2x8x256xf32, #tpu.memory_space<vmem>>, vector<1x8x256xf32>
      %39 = vector.shape_cast %38 : vector<1x8x256xf32> to vector<8x256xf32>
      %40 = vector.shape_cast %37 : vector<8x256xf32> to vector<1x8x256xf32>
      tpu.vector_store %arg6[%c1_19, %c0_20, %c0_21], %40 {strides = array<i32>} : memref<2x8x256xf32, #tpu.memory_space<vmem>>, vector<1x8x256xf32>,
    } else {
    }
    return
  }
  func.func @transform_0(%arg0: i32, %arg1: i32) -> (i32, i32, i32) {
    %c1_i32 = arith.constant 1 : i32
    %0 = arith.subi %c1_i32, %arg0 : i32
    %1 = arith.muli %0, %arg1 : i32
    %c0_i32 = arith.constant 0 : i32
    %2 = arith.muli %arg0, %c0_i32 : i32
    %3 = arith.addi %1, %2 : i32
    %c0_i32_0 = arith.constant 0 : i32
    %c0_i32_1 = arith.constant 0 : i32
    %c0_i32_2 = arith.constant 0 : i32
    return %3, %c0_i32_0, %c0_i32_1 : i32, i32, i32
  }
  func.func @transform_1(%arg0: i32, %arg1: i32) -> (i32, i32) {
    %c0_i32 = arith.constant 0 : i32
    %c0_i32_0 = arith.constant 0 : i32
    %c0_i32_1 = arith.constant 0 : i32
    return %c0_i32, %c0_i32_0 : i32, i32
  }
  func.func @transform_2(%arg0: i32, %arg1: i32) -> (i32, i32) {
    %c0_i32 = arith.constant 0 : i32
    %c0_i32_0 = arith.constant 0 : i32
    %c0_i32_1 = arith.constant 0 : i32
    return %c0_i32, %c0_i32_0 : i32, i32
  }
  func.func @transform_3(%arg0: i32, %arg1: i32) -> (i32, i32) {
    %c0_i32 = arith.constant 0 : i32
    %c0_i32_0 = arith.constant 0 : i32
    %c0_i32_1 = arith.constant 0 : i32
    return %c0_i32, %c0_i32_0 : i32, i32
  }
  func.func @transform_4(%arg0: i32, %arg1: i32) -> (i32, i32, i32) {
    %0 = arith.muli %arg0, %arg1 : i32
    %c0_i32 = arith.constant 0 : i32
    %c0_i32_0 = arith.constant 0 : i32
    %c0_i32_1 = arith.constant 0 : i32
    return %0, %c0_i32, %c0_i32_0 : i32, i32, i32
  }
}

</mosaic_0001>

<bundles_post_ra>
// kernel: passport_private_block.1
= control target key start
LH: loop header
LB: loop body
LE: loop exit
PB: predicated region body
PF: predicated region fallthrough
CT: control target
= control target key end

     0   :  { %s681_s15 = smov 0   ;;  %s683_s16 = smov 0   ;;  %s793_s0 = inlined_call_operand.vmem [shape: f32[2,36,256], index: 0, kind: input, shape index: {}]   ;;  %s794_s1 = inlined_call_operand.vmem [shape: f32[8,36], index: 1, kind: input, shape index: {}]   ;;  %s795_s2 = inlined_call_operand.vmem [shape: f32[8,1], index: 2, kind: input, shape index: {}]   ;;  %s796_s3 = inlined_call_operand.vmem [shape: f32[8,1], index: 3, kind: input, shape index: {}]   ;;  %s797_s4 = inlined_call_operand.vmem [shape: f32[2,8,256], index: 4, kind: output, shape index: {}]  }
   0x1   :  { %s685_s17 = smov 0  }
   0x2 LB: > { %s26_s18 = sadd.s32 1, %s648_s16  ;;  %p570_p0 = scmp.ge.s32.totalorder %s652_s17, 1  ;;  %s652_s17 = sphi %s685_s17, %s14_s17   ;;  %s648_s16 = sphi %s683_s16, %s799_s16   ;;  %s644_s15 = sphi %s681_s15, %s798_s15  }
   0x3   : > { %p28_p1 = scmp.ge.s32.totalorder %s26_s18, 2  ;;  %p186_p2 = scmp.lt.s32.totalorder %s652_s17, 3 }
   0x5   : > { %s801_s18 = smov (%p28_p1, %s26_s18), 0  ;;  %p187_p3 = pnand %p570_p0, %p186_p2 }
   0x6   : > { %p571_p4 = scmp.ne.s32.totalorder (!%p187_p3), %s644_s15, 0 }
   0x7   : > { %190 = sbr.rel (%p187_p3) target bundleno = 469 (0x1d5), region = 36 }
   0xc   : > { %240 = sbr.rel (%p571_p4) target bundleno = 292 (0x124), region = 40 }
  0x11   : > { %v257_v0 = vld [vmem:[%s793_s0 + $0x40] sm:$0xf]  ;;  %vm263_vm0 = vcmask 1043456   ;;  %v258_v1 = vld [vmem:[%s793_s0 + $0x48] sm:$0xf]  ;;  %v255_v2 = vld [vmem:[%s793_s0 + $0x30] sm:$0xff] }
  0x12   : > { %572 = vmatpush.msk.msra.mxu0 %vm263_vm0, %v257_v0  ;;  %574 = vmatpush.msk.msra.mxu1 %vm263_vm0, %v258_v1  ;;  %v584_v3 = vld [vmem:[%s793_s0 + $0x90] sm:$0xf]  ;;  %v585_v4 = vld [vmem:[%s793_s0 + $0x98] sm:$0xf]  ;;  %v582_v6 = vld [vmem:[%s793_s0 + $0x80] sm:$0xff]  ;;  %vm259_vm1 = vcmask 293888  }
  0x13   : > { %v256_v5 = vld [vmem:[%s793_s0 + $0x38] sm:$0xff]  ;;  %586 = vmatpush.msk.msra.mxu2 %vm263_vm0, %v584_v3  ;;  %588 = vmatpush.msk.msra.mxu3 %vm263_vm0, %v585_v4  ;;  %v583_v7 = vld [vmem:[%s793_s0 + $0x88] sm:$0xff]  ;;  %v253_v8 = vld [vmem:[%s793_s0 + $0x20] sm:$0xff]  ;;  %vm245_vm2 = vcmask 7168   ;;  %v654_v33 = vmov 0.0  }
  0x14   : > { %282 = vmatpush.msra.mxu0 %v255_v2  ;;  %302 = vmatpush.msra.mxu1 %v256_v5  ;;  %v254_v9 = vld [vmem:[%s793_s0 + $0x28] sm:$0xff]  ;;  %v580_v10 = vld [vmem:[%s793_s0 + $0x70] sm:$0xff]  ;;  %v581_v11 = vld [vmem:[%s793_s0 + $0x78] sm:$0xff]  ;;  %246 = vst.msk [vmem:[#allocation3] sm:$0xff] %vm245_vm2, %v654_v33 }
  0x15   : > { %355 = vmatpush.msra.mxu2 %v582_v6  ;;  %375 = vmatpush.msra.mxu3 %v583_v7  ;;  %v251_v12 = vld [vmem:[%s793_s0 + $0x10] sm:$0xff]  ;;  %v252_v13 = vld [vmem:[%s793_s0 + $0x18] sm:$0xff]  ;;  %v578_v14 = vld [vmem:[%s793_s0 + $0x60] sm:$0xff]  ;;  %247 = vst.msk [vmem:[#allocation4] sm:$0xff] %vm245_vm2, %v654_v33 }
  0x16   : > { %283 = vmatpush.msra.mxu0 %v253_v8  ;;  %303 = vmatpush.msra.mxu1 %v254_v9  ;;  %v579_v15 = vld [vmem:[%s793_s0 + $0x68] sm:$0xff]  ;;  %v249_v16 = vld [vmem:[%s793_s0] sm:$0xff]  ;;  %v576_v18 = vld [vmem:[%s793_s0 + $0x50] sm:$0xff] }
  0x17   : > { %356 = vmatpush.msra.mxu2 %v580_v10  ;;  %376 = vmatpush.msra.mxu3 %v581_v11  ;;  %v250_v17 = vld [vmem:[%s793_s0 + $0x8] sm:$0xff]  ;;  %v577_v19 = vld [vmem:[%s793_s0 + $0x58] sm:$0xff]  ;;  %v248_v20 = vld [vmem:[%s794_s1] sm:$0xff] }
  0x18   : > { %284 = vmatpush.msra.mxu0 %v251_v12  ;;  %304 = vmatpush.msra.mxu1 %v252_v13 }
  0x19   : > { %357 = vmatpush.msra.mxu2 %v578_v14  ;;  %377 = vmatpush.msra.mxu3 %v579_v15 }
  0x1a   : > { %285 = vmatpush.msra.mxu0 %v249_v16  ;;  %305 = vmatpush.msra.mxu1 %v250_v17 }
  0x1b   : > { %358 = vmatpush.msra.mxu2 %v576_v18  ;;  %378 = vmatpush.msra.mxu3 %v577_v19  ;;  %v399_v36 = vld [vmem:[#allocation3] sm:$0xff] }
  0x1c   : > { %573 = vmatmul.msk.f32.vlgmr.msra.gmra.mxu0 %vm259_vm1, %v248_v20  ;;  %575 = vmatmul.msk.f32.vlgmr.msra.gmra.mxu1 %vm259_vm1, %v248_v20  ;;  %v403_v41 = vld [vmem:[#allocation4] sm:$0xff] }
  0x1d   : > { %587 = vmatmul.msk.f32.vlgmr.msra.gmra.mxu2 %vm259_vm1, %v248_v20  ;;  %589 = vmatmul.msk.f32.vlgmr.msra.gmra.mxu3 %vm259_vm1, %v248_v20 }
  0x99   : > { %v287_v21 = vpop.f32.mrf.mxu0  ;;  %v307_v22 = vpop.f32.mrf.mxu1 }
  0x9a   : > { %314 = vst [vmem:[#allocation2 + $0x10] sm:$0xff] %v287_v21  ;;  %v316_v23 = vadd.f32 %v307_v22, %v287_v21  ;;  %v320_v24 = vmul.f32 %v287_v21, %v287_v21  ;;  %v321_v25 = vmul.f32 %v307_v22, %v307_v22 }
  0x9b   : > { %315 = vst [vmem:[#allocation2] sm:$0xff] %v307_v22 }
  0x9c   : > { %317 = vadd.xlane.f32.xlu0 %v316_v23  ;;  %v322_v28 = vadd.f32 %v321_v25, %v320_v24 }
  0xa0   : > { %v360_v26 = vpop.f32.mrf.mxu2  ;;  %v380_v27 = vpop.f32.mrf.mxu3 }
  0xa1   : > { %590 = vst [vmem:[#allocation2 + $0x18] sm:$0xff] %v360_v26  ;;  %v389_v29 = vadd.f32 %v380_v27, %v360_v26  ;;  %v393_v30 = vmul.f32 %v360_v26, %v360_v26  ;;  %v394_v31 = vmul.f32 %v380_v27, %v380_v27 }
  0xa2   : > { %591 = vst [vmem:[#allocation2 + $0x8] sm:$0xff] %v380_v27 }
  0xa3   : > { %390 = vadd.xlane.f32.xlu1 %v389_v29  ;;  %v395_v32 = vadd.f32 %v394_v31, %v393_v30 }
  0xa4   : > { %323 = vadd.xlane.f32.xlu0 %v322_v28 }
  0xab   : > { %396 = vadd.xlane.f32.xlu1 %v395_v32 }
 0x10f   : > { %v318_v34 = vpop.xlane.xlu0 %317 }
 0x116   : > { %v391_v35 = vpop.xlane.xlu1 %390 }
 0x117   : > { %v392_v37 = vadd.f32 %v391_v35, %v318_v34  ;;  %v324_v39 = vpop.xlane.xlu0 %323 }
 0x119   : > { %v400_v38 = vadd.f32 %v399_v36, %v392_v37 }
 0x11b   : > { %402 = vst.msk [vmem:[#allocation3] sm:$0xff] %vm245_vm2, %v400_v38 }
 0x11e   : > { %v397_v40 = vpop.xlane.xlu1 %396 }
 0x11f   : > { %v398_v42 = vadd.f32 %v397_v40, %v324_v39 }
 0x121   : > { %v404_v43 = vadd.f32 %v403_v41, %v398_v42 }
 0x123   : > { %405 = vst.msk [vmem:[#allocation4] sm:$0xff] %vm245_vm2, %v404_v43 }
 0x124 PF: > { %p592_p5 = scmp.ne.s32.totalorder %s644_s15, 1 }
 0x126   : > { %409 = sbr.rel (%p592_p5) target bundleno = 469 (0x1d5), region = 48 }
 0x12b   : > { %v414_v44 = vld [vmem:[#allocation3] sm:$0xff]  ;;  %v416_v45 = vld [vmem:[#allocation4] sm:$0xff]  ;;  %v655_v46 = vmov 0   ;;  %vm434_vm6 = vcmask 7168   ;;  %v448_v4 = vld [vmem:[#allocation2 + $0x10] sm:$0xff] }
 0x12c   : > { %627 = vset.pattern.permute.xlu0 %v655_v46  ;;  %v415_v47 = vmul.f32 0.001953125, %v414_v44  ;;  %v417_v48 = vmul.f32 0.001953125, %v416_v45  ;;  %v432_v59 = vld [vmem:[%s795_s2] sm:$0xff]  ;;  %v593_v6 = vld [vmem:[#allocation2 + $0x18] sm:$0xff]  ;;  %v594_v7 = vld [vmem:[#allocation2 + $0x8] sm:$0xff] }
 0x12d   : > { %v436_v62 = vld [vmem:[%s796_s3] sm:$0xff] }
 0x12e   : > { %v418_v49 = vmul.f32 %v415_v47, %v415_v47  ;;  %v449_v5 = vld [vmem:[#allocation2] sm:$0xff] }
 0x130   : > { %v419_v50 = vsub.f32 %v417_v48, %v418_v49 }
 0x132   : > { %v420_v51 = vmax.f32 %v419_v50, 0.0 }
 0x134   : > { %v421_v52 = vadd.f32 1e-05, %v420_v51 }
 0x136   : > { %628 = vrsqrt.f32 %v421_v52  ;;  %vm428_vm3 = vweird.f32 %v421_v52 }
 0x13c   : > { %v629_v53 = vpop.eup %628 }
 0x13d   : > { %v423_v54 = vmul.f32 %v629_v53, %v421_v52  ;;  %vm429_vm4 = vweird.f32 %v629_v53 }
 0x13e   : > { %vm430_vm5 = vmor %vm428_vm3, %vm429_vm4 }
 0x13f   : > { %v424_v55 = vmul.f32 %v629_v53, %v423_v54 }
 0x141   : > { %v425_v56 = vmul.f32 0.5, %v424_v55 }
 0x143   : > { %v426_v57 = vsub.f32 1.5, %v425_v56 }
 0x145   : > { %v427_v58 = vmul.f32 %v629_v53, %v426_v57 }
 0x147   : > { %v431_v60 = vsel %vm430_vm5, %v629_v53, %v427_v58 }
 0x148   : > { %v433_v61 = vmul.f32 %v432_v59, %v431_v60 }
 0x14a   : > { %435 = vst.msk [vmem:[#allocation5] sm:$0xff] %vm434_vm6, %v433_v61  ;;  %v437_v63 = vmul.f32 %v433_v61, %v415_v47 }
 0x14c   : > { %v438_v0 = vsub.f32 %v436_v62, %v437_v63 }
 0x14e   : > { %440 = vst.msk [vmem:[#allocation5 + $0x8] sm:$0xff] %vm434_vm6, %v438_v0 }
 0x151   : > { %v441_v1 = vld [vmem:[#allocation5] sm:$0xff] }
 0x152   : > { %452 = vperm.xlu0 %627, %v441_v1  }
 0x155   : > { %v443_v2 = vld [vmem:[#allocation5 + $0x8] sm:$0xff] }
 0x15a   : > { %459 = vperm.xlu0 %627, %v443_v2  }
 0x1c4   : > { %v453_v3 = vpop.permute.xlu0 %452 }
 0x1c5   : > { %v455_v8 = vmul.f32 %v453_v3, %v448_v4  ;;  %v456_v9 = vmul.f32 %v453_v3, %v449_v5  ;;  %v474_v10 = vmul.f32 %v593_v6, %v453_v3  ;;  %v475_v11 = vmul.f32 %v594_v7, %v453_v3 }
 0x1cc   : > { %v460_v12 = vpop.permute.xlu0 %459 }
 0x1cd   : > { %v462_v13 = vadd.f32 %v460_v12, %v455_v8  ;;  %v463_v14 = vadd.f32 %v460_v12, %v456_v9  ;;  %v476_v15 = vadd.f32 %v474_v10, %v460_v12  ;;  %v477_v16 = vadd.f32 %v475_v11, %v460_v12 }
 0x1cf   : > { %v464_v17 = vmax.f32 %v462_v13, 0.0  ;;  %v465_v18 = vmax.f32 %v463_v14, 0.0  ;;  %v478_v19 = vmax.f32 %v476_v15, 0.0  ;;  %v479_v20 = vmax.f32 %v477_v16, 0.0 }
 0x1d1   : > { %466 = vst [vmem:[%s797_s4] sm:$0xff] %v464_v17 }
 0x1d2   : > { %467 = vst [vmem:[%s797_s4 + $0x8] sm:$0xff] %v465_v18 }
 0x1d3   : > { %595 = vst [vmem:[%s797_s4 + $0x10] sm:$0xff] %v478_v19 }
 0x1d4   : > { %596 = vst [vmem:[%s797_s4 + $0x18] sm:$0xff] %v479_v20 }
 0x1d5 PF: > { %s14_s17 = sadd.s32 1, %s652_s17   ;;  %s798_s15 = smov %s648_s16 }
 0x1d6   : > { %p11_p6 = scmp.ge.s32.totalorder %s14_s17, 4   ;;  %s799_s16 = smov %s801_s18 }
 0x1d8   :  { %13 = sbr.rel (!%p11_p6) target bundleno = 2 (0x2), region = 90 }

</bundles_post_ra>
